<compile_context>
chip_gen: v6e
topology: v6e:2x2x1
jax: 0.10.0
libtpu: 0.0.40
codegen_flags: <defaults>
</compile_context>

<pallas_src>
import math

import jax
import jax.numpy as jnp
from jax.experimental import pallas as pl
from jax.experimental.pallas import tpu as pltpu

# NOTE: deliberately matches the PyTorch module's constant (self.torch_PI),
# which is NOT math.pi. The difference is far below fp32 noise; do not "fix".
TORCH_PI = 3.1415926536
SQRT_2_OVER_PI = math.sqrt(2.0 / TORCH_PI)
GELU_COEF = 0.044715

_TARGET_BLOCK_BYTES = 8 * 1024 * 1024       # ~8 MiB per block (swept 2/4/8)
_VMEM_MARGIN_BYTES = 4 * 1024 * 1024        # headroom on top of 4x block bytes
_MIN_GRID = 4                               # feeds both v7x TCs + overlaps DMA
_SLAB_WIDTHS = (8192, 4096, 2048, 1024, 512, 256, 128)

_VMEM_CAP_CACHE = None


def _vmem_cap_bytes():
    """75% of physical VMEM (generation-aware); conservative fallback = 48 MiB."""
    global _VMEM_CAP_CACHE
    if _VMEM_CAP_CACHE is None:
        cap = None
        try:
            cap = getattr(pltpu.get_tpu_info(), "vmem_capacity_bytes", None)
        except Exception:
            cap = None
        if not cap:
            cap = 64 << 20                   # v7x per-TC physical VMEM (worst case)
        _VMEM_CAP_CACHE = int(0.75 * cap)
    return _VMEM_CAP_CACHE


def _gelu_kernel(x_ref, o_ref):
    # Upcast to f32 for the polynomial + tanh (matches PyTorch's effective
    # behavior for half-precision inputs); no-op for f32. Cast back on store.
    x = x_ref[...].astype(jnp.float32)
    inner = SQRT_2_OVER_PI * (x + GELU_COEF * (x * x * x))
    y = 0.5 * x * (1.0 + jnp.tanh(inner))
    o_ref[...] = y.astype(o_ref.dtype)


def _gelu_jnp(x):
    """Plain-JAX reference / small-tensor fallback (same formula)."""
    xf = x.astype(jnp.float32)
    y = 0.5 * xf * (1.0 + jnp.tanh(SQRT_2_OVER_PI * (xf + GELU_COEF * (xf * xf * xf))))
    return y.astype(x.dtype)


def _sublane_pack(dtype):
    # Native vreg sublane packing: 8 for 4-byte, 16 for 2-byte, 32 for 1-byte.
    return max(8, 32 // dtype.itemsize)


def _choose_tile_r(R, C, itemsize, pack):
    """Byte-budgeted row tile with a minimum-grid-size floor."""
    tile_r = max(1, _TARGET_BLOCK_BYTES // (C * itemsize))
    tile_r = min(tile_r, R)
    if tile_r < R:
        tile_r = max(pack, (tile_r // pack) * pack)

    # Grid floor: keep >= _MIN_GRID blocks when the row count allows it, so the
    # "parallel" axis shards across both v7x TensorCores and the pipeline always
    # has blocks to double-buffer (also helps v5e/v6e single-block sizes).
    max_blocks = -(-R // pack)               # cdiv(R, pack)
    target_blocks = min(_MIN_GRID, max_blocks)
    while -(-R // tile_r) < target_blocks and tile_r > pack:
        tile_r = max(pack, ((tile_r // 2) // pack) * pack)
    return tile_r


def _gelu_pallas_2d(x2, *, donate=False):
    """Run the kernel over a 2-D (rows, lanes) slab; lanes multiple of 128
    (or rows/lanes equal to the full dims)."""
    R, C = x2.shape
    itemsize = x2.dtype.itemsize
    pack = _sublane_pack(x2.dtype)

    tile_r = _choose_tile_r(R, C, itemsize, pack)
    grid_r = pl.cdiv(R, tile_r)               # ragged last block handled by Pallas
    block_bytes = tile_r * C * itemsize
    # in + out, double-buffered => ~4x block bytes resident, plus margin,
    # capped below physical VMEM (generation-aware).
    vmem_limit = int(min(_vmem_cap_bytes(),
                         max(8 << 20, 4 * block_bytes + _VMEM_MARGIN_BYTES)))

    kwargs = {}
    if donate:
        # Footprint-only optimization: output buffer aliases the input. Only
        # use when the caller no longer needs x.
        kwargs["input_output_aliases"] = {0: 0}

    return pl.pallas_call(
        _gelu_kernel,
        out_shape=jax.ShapeDtypeStruct((R, C), x2.dtype),
        grid=(grid_r,),
        in_specs=[pl.BlockSpec((tile_r, C), lambda i: (i, 0))],
        out_specs=pl.BlockSpec((tile_r, C), lambda i: (i, 0)),
        compiler_params=pltpu.CompilerParams(
            dimension_semantics=("parallel",),   # shards across both TCs on v7x
            vmem_limit_bytes=vmem_limit,
        ),
        **kwargs,
    )(x2)


def my_gelu(x, *, min_pallas_bytes=1 << 20, donate=False):
    """Tanh-approx GELU (PyTorch MyGELU.forward). Accepts any shape/float dtype."""
    x = jnp.asarray(x)
    orig_shape = x.shape
    n = x.size
    itemsize = x.dtype.itemsize

    # Tiny tensors: kernel launch + grid overhead dominates -> plain jnp.
    if n == 0 or n * itemsize < min_pallas_bytes:
        return _gelu_jnp(x)

    flat = x.reshape(-1)

    # Elementwise op => any 2-D factorization is valid. Pick the widest
    # lane-dense slab width that divides N (no padding, no extra HBM passes).
    for c in _SLAB_WIDTHS:
        if n % c == 0:
            out = _gelu_pallas_2d(flat.reshape(n // c, c), donate=donate)
            return out.reshape(orig_shape)

    # Unaligned total element count (rare for NN activations): run Pallas on
    # the 128-aligned head, compute the tiny (<128-elem) tail with plain jnp,
    # and stitch with a single concatenate (cheaper than pad+slice the whole
    # array: at most one extra HBM pass instead of ~two).
    lane = 128
    n_head = (n // lane) * lane
    if n_head == 0:
        return _gelu_jnp(x)
    head_c = lane
    for c in _SLAB_WIDTHS:
        if n_head % c == 0:
            head_c = c
            break
    head = _gelu_pallas_2d(flat[:n_head].reshape(n_head // head_c, head_c),
                           donate=False).reshape(-1)
    tail = _gelu_jnp(flat[n_head:])
    return jnp.concatenate([head, tail]).reshape(orig_shape)


if __name__ == "__main__":
    key = jax.random.PRNGKey(0)
    k1, k2, k3, k4 = jax.random.split(key, 4)

    # (1) Small aligned f32 input (batch=2, channels=4, 16x16), forced through
    #     the Pallas path (min_pallas_bytes=0) so the kernel actually runs.
    x1 = jax.random.normal(k1, (2, 4, 16, 16), dtype=jnp.float32)
    y1 = my_gelu(x1, min_pallas_bytes=0)
    jax.block_until_ready(y1)
    assert y1.shape == x1.shape and y1.dtype == x1.dtype
    assert float(jnp.max(jnp.abs(y1 - _gelu_jnp(x1)))) < 1e-5

    # (2) Unaligned total element count -> exercises the head/tail split path
    #     (Pallas on the 128-aligned head, jnp on the tail) and a ragged grid.
    x2 = jax.random.normal(k2, (2, 7, 13, 50), dtype=jnp.float32)
    y2 = my_gelu(x2, min_pallas_bytes=0)
    jax.block_until_ready(y2)
    assert y2.shape == x2.shape
    assert float(jnp.max(jnp.abs(y2 - _gelu_jnp(x2)))) < 1e-5

    # (3) bf16 stays bf16 in HBM; kernel computes in f32 internally.
    x3 = jax.random.normal(k3, (2, 4, 16, 32), dtype=jnp.bfloat16)
    y3 = my_gelu(x3, min_pallas_bytes=0)
    jax.block_until_ready(y3)
    assert y3.dtype == jnp.bfloat16
    err3 = jnp.max(jnp.abs(y3.astype(jnp.float32) - _gelu_jnp(x3).astype(jnp.float32)))
    assert float(err3) < 2e-2

    # (4) Aligned multi-block path -> exercises the minimum-grid-size floor
    #     (grid of 4 blocks over a 256x1024 slab).
    x4 = jax.random.normal(k4, (256, 1024), dtype=jnp.float32)
    y4 = my_gelu(x4, min_pallas_bytes=0)
    jax.block_until_ready(y4)
    assert float(jnp.max(jnp.abs(y4 - _gelu_jnp(x4)))) < 1e-5

    # (5) Default small-tensor fallback path (plain jnp) stays correct.
    y5 = my_gelu(x1)
    jax.block_until_ready(y5)
    assert float(jnp.max(jnp.abs(y5 - _gelu_jnp(x1)))) < 1e-5

    print("KERNEL_OK")
</pallas_src>

<mosaic_0001>
module attributes {stable_mosaic.version = 11 : i64} {
  func.func @_gelu_kernel(%arg0: i32, %arg1: memref<1x2048xf32, #tpu.memory_space<vmem>>, %arg2: memref<1x2048xf32, #tpu.memory_space<vmem>>) attributes {dimension_semantics = [#tpu.dimension_semantics<parallel>], iteration_bounds = array<i64: 1>, scalar_prefetch = 0 : i64, scratch_operands = 0 : i64, tpu.core_type = #tpu.core_type<tc>, window_params = [{transform_indices = @transform_0, window_bounds = array<i64: 1, 2048>}, {transform_indices = @transform_1, window_bounds = array<i64: 1, 2048>}]} {
    %c0 = arith.constant 0 : index
    %c0_0 = arith.constant 0 : index
    %0 = vector.load %arg1[%c0, %c0_0] : memref<1x2048xf32, #tpu.memory_space<vmem>>, vector<1x2048xf32>
    %1 = arith.mulf %0, %0 : vector<1x2048xf32>
    %2 = arith.mulf %1, %0 : vector<1x2048xf32>
    %cst = arith.constant 4.471500e-02 : f32
    %3 = vector.broadcast %cst : f32 to vector<1x2048xf32>
    %4 = arith.mulf %3, %2 : vector<1x2048xf32>
    %5 = arith.addf %0, %4 : vector<1x2048xf32>
    %cst_1 = arith.constant 0.797884583 : f32
    %6 = vector.broadcast %cst_1 : f32 to vector<1x2048xf32>
    %7 = arith.mulf %6, %5 : vector<1x2048xf32>
    %cst_2 = arith.constant 5.000000e-01 : f32
    %8 = vector.broadcast %cst_2 : f32 to vector<1x2048xf32>
    %9 = arith.mulf %8, %0 : vector<1x2048xf32>
    %10 = math.tanh %7 : vector<1x2048xf32>
    %cst_3 = arith.constant 1.000000e+00 : f32
    %11 = vector.broadcast %cst_3 : f32 to vector<1x2048xf32>
    %12 = arith.addf %11, %10 : vector<1x2048xf32>
    %13 = arith.mulf %9, %12 : vector<1x2048xf32>
    %c0_4 = arith.constant 0 : index
    %c0_5 = arith.constant 0 : index
    %14 = vector.load %arg2[%c0_4, %c0_5] : memref<1x2048xf32, #tpu.memory_space<vmem>>, vector<1x2048xf32>
    tpu.vector_store %arg2[%c0_4, %c0_5], %13 {strides = array<i32>} : memref<1x2048xf32, #tpu.memory_space<vmem>>, vector<1x2048xf32>,
    return
  }
  func.func @transform_0(%arg0: i32) -> (i32, i32) {
    %c0_i32 = arith.constant 0 : i32
    %c0_i32_0 = arith.constant 0 : i32
    return %arg0, %c0_i32 : i32, i32
  }
  func.func @transform_1(%arg0: i32) -> (i32, i32) {
    %c0_i32 = arith.constant 0 : i32
    %c0_i32_0 = arith.constant 0 : i32
    return %arg0, %c0_i32 : i32, i32
  }
}

</mosaic_0001>

<bundles_post_ra>
// kernel: tpu_custom_call.1
= control target key start
LH: loop header
LB: loop body
LE: loop exit
PB: predicated region body
PF: predicated region fallthrough
CT: control target
= control target key end

     0   :  { %6 = vsyncpa [#allocation3], 0  ;;  %s126_s0 = inlined_call_operand.hbm [shape: f32[1,2048], index: 0, kind: input, shape index: {}]   ;;  %s127_s1 = inlined_call_operand.hbm [shape: f32[1,2048], index: 1, kind: output, shape index: {}]  }
   0x1   :  { %7 = vsyncpa [#allocation4], 0  ;;  %s108_s6 = smov [#allocation2]  }
   0x2   :  { %s14_s7 = sshll.u32 %s108_s6, 4  ;;  %s15_s7 = int_to_ptr.vmem [resolvable:$true] %s14_s7 }
   0x3   :  { %s72_s8 = scalar_lea.vmem %s15_s7, 256  ;;  %p77_p1 = scmp.lt.s32.totalorder %s15_s7, %s15_s7 }
   0x4   :  { %p73_p0 = scmp.ne.s32.totalorder %s15_s7, %s72_s8  ;;  %p78_p2 = scmp.lt.s32.totalorder %s72_s8, %s72_s8 }
   0x6   :  { %p79_p3 = por %p78_p2, %p77_p1 }
   0x8   :  { %p80_p4 = pnand %p79_p3, %p73_p0 }
   0xa   :  { %83 = shalt.err (!%p80_p4)
}
   0xb   :  { %17 = dma.hbm_to_vmem [thread:$0]  %s126_s0, 256, %s15_s7, [#allocation3]  }
   0xc   :  { %104 = dma.done.wait [#allocation3], 256  }
   0xd   :  { %105 = vsyncadd [#allocation3], 4294967040  ;;  %v21_v0 = vld [vmem:[#allocation2] sm:$0xff]  ;;  %v22_v1 = vld [vmem:[#allocation2 + $0x8] sm:$0xff]  ;;  %s109_s0 = smov [#allocation5]  }
   0xe   :  { %v23_v2 = vmul.f32 %v21_v0, %v21_v0  ;;  %v24_v3 = vmul.f32 %v22_v1, %v22_v1  ;;  %v33_v12 = vmul.f32 0.5, %v21_v0  ;;  %v34_v14 = vmul.f32 0.5, %v22_v1  ;;  %s49_s11 = sshll.u32 %s109_s0, 4  ;;  %s50_s11 = int_to_ptr.vmem [resolvable:$true] %s49_s11 }
   0xf   :  { %s84_s12 = scalar_lea.vmem %s50_s11, 256  ;;  %p89_p6 = scmp.lt.s32.totalorder %s50_s11, %s50_s11 }
  0x10   :  { %v25_v4 = vmul.f32 %v23_v2, %v21_v0  ;;  %v26_v5 = vmul.f32 %v24_v3, %v22_v1  ;;  %p85_p5 = scmp.ne.s32.totalorder %s50_s11, %s84_s12  ;;  %p90_p7 = scmp.lt.s32.totalorder %s84_s12, %s84_s12 }
  0x12   :  { %v27_v6 = vmul.f32 0.044715, %v25_v4  ;;  %v28_v7 = vmul.f32 0.044715, %v26_v5  ;;  %p91_p8 = por %p90_p7, %p89_p6 }
  0x14   :  { %v29_v8 = vadd.f32 %v27_v6, %v21_v0  ;;  %v30_v9 = vadd.f32 %v28_v7, %v22_v1  ;;  %p92_p9 = pnand %p91_p8, %p85_p5 }
  0x16   :  { %v31_v10 = vmul.f32 0.7978846, %v29_v8  ;;  %v32_v11 = vmul.f32 0.7978846, %v30_v9 }
  0x18   :  { %60 = vtanh.f32 %v31_v10 }
  0x19   :  { %62 = vtanh.f32 %v32_v11 }
  0x25   :  { %v61_v13 = vpop.eup %60 }
  0x26   :  { %v63_v15 = vpop.eup %62  ;;  %v37_v16 = vadd.f32 1.0, %v61_v13 }
  0x27   :  { %v38_v17 = vadd.f32 1.0, %v63_v15 }
  0x28   :  { %v39_v18 = vmul.f32 %v37_v16, %v33_v12 }
  0x29   :  { %v40_v19 = vmul.f32 %v38_v17, %v34_v14 }
  0x2a   :  { %41 = vst [vmem:[#allocation5] sm:$0xff] %v39_v18 }
  0x2b   :  { %42 = vst [vmem:[#allocation5 + $0x8] sm:$0xff] %v40_v19 }
  0x2c   :  { %95 = shalt.err (!%p92_p9)
}
  0x2d   :  { %52 = dma.vmem_to_hbm [thread:$0]  %s50_s11, 256, %s127_s1, [#allocation4]  }
  0x2e   :  { %106 = dma.done.wait [#allocation4], 256  }
  0x2f   :  { %107 = vsyncadd [#allocation4], 4294967040 }
  0x30   :  { %56 = vsyncpa [#allocation3], 1 }
  0x31   :  { %57 = vsyncpa [#allocation4], 1 }

</bundles_post_ra>
